<compile_context>
chip_gen: v6e
topology: v6e:2x2x1
jax: 0.10.0
libtpu: 0.0.40
codegen_flags: <defaults>
</compile_context>

<pallas_src>
import functools

import jax
import jax.numpy as jnp
from jax.experimental import pallas as pl
from jax.experimental.pallas import tpu as pltpu


def _bypass_conv_kernel(x_ref, w_ref, b_ref, o_ref, ext_ref, col_ref, *, H, W):
    # x_ref:   (1, C, P)          one image, NCHW with spatial flattened (P = H*W)
    # w_ref:   (Cout, 9*Cin)      conv weights, tap-major along the K axis
    # b_ref:   (Cout, 1)          bias
    # o_ref:   (1, C, P)          output = conv(x) + bias + x   (Bypass)
    # ext_ref: (C, P + 2*(W+1))   VMEM scratch: zero-padded flattened image
    # col_ref: (9*Cin, P)         VMEM scratch: im2col matrix
    C = x_ref.shape[1]
    P = H * W
    PAD = W + 1  # largest |flattened offset| of a 3x3 tap

    x = x_ref[0].astype(jnp.float32)                       # (C, P)

    # In-kernel zero padding: only the two pad stripes need (re)zeroing each
    # step; the interior is fully overwritten by the image store below.
    ext_ref[:, pl.ds(0, PAD)] = jnp.zeros((C, PAD), jnp.float32)
    ext_ref[:, pl.ds(PAD + P, PAD)] = jnp.zeros((C, PAD), jnp.float32)
    ext_ref[:, pl.ds(PAD, P)] = x

    # Column index of every flattened spatial position, used to mask the taps
    # whose horizontal shift wraps across a row boundary.  One iota, two
    # comparisons, reused by all six edge-sensitive taps.
    col = jax.lax.broadcasted_iota(jnp.int32, (C, P), 1) % W
    left_ok = col >= 1          # valid positions for dx == 0 taps
    right_ok = col <= W - 2     # valid positions for dx == 2 taps
    zero = jnp.zeros((C, P), jnp.float32)

    # Build im2col: 9 shifted copies of the image stacked along the K axis.
    # A tap (dy, dx) reads the flattened image at offset (dy-1)*W + (dx-1);
    # vertical out-of-range positions land in the zero padding of ext_ref,
    # horizontal wrap-around positions are masked to zero.
    t = 0
    for dy in range(3):
        for dx in range(3):
            off = (dy - 1) * W + (dx - 1)
            tap = ext_ref[:, pl.ds(PAD + off, P)]          # (C, P)
            if dx == 0:
                tap = jnp.where(left_ok, tap, zero)        # left edge -> 0
            elif dx == 2:
                tap = jnp.where(right_ok, tap, zero)       # right edge -> 0
            col_ref[pl.ds(t * C, C), :] = tap
            t += 1

    # Single MXU contraction over all 9 taps and Cin: (Cout, 9*Cin) @ (9*Cin, P).
    acc = jnp.dot(w_ref[...], col_ref[...],
                  preferred_element_type=jnp.float32)      # (Cout, P)

    # Bias + residual (Bypass semantics: x + conv(x)), lane-dense store.
    o_ref[0] = (acc + b_ref[...] + x).astype(o_ref.dtype)


def bypass_forward(x_nchw, w_hwio, b):
    """Bypass(Conv2d(C, C, 3, padding=1)) forward.  x_nchw: (N, C, H, W)."""
    N, C, H, W = x_nchw.shape
    KH, KW, Cin, Cout = w_hwio.shape
    assert (KH, KW) == (3, 3) and Cin == C
    assert Cout == C, "residual add requires matching channel count"
    P = H * W

    # Free relayout (contiguous): NCHW stays NCHW, spatial dims flattened so
    # H*W sits on the lane axis.  No transposes, no HBM padding pass.
    x_flat = x_nchw.reshape(N, C, P)
    # (3,3,Cin,Cout) -> (Cout, 9*Cin); element [co, t*Cin+ci] = w[dy,dx,ci,co]
    # with t = dy*3+dx, matching the kernel's im2col row order.
    w2d = jnp.transpose(w_hwio, (3, 0, 1, 2)).reshape(Cout, 9 * Cin)
    w2d = w2d.astype(jnp.float32)
    b2d = b.reshape(Cout, 1).astype(jnp.float32)

    kernel = functools.partial(_bypass_conv_kernel, H=H, W=W)

    out_flat = pl.pallas_call(
        kernel,
        out_shape=jax.ShapeDtypeStruct((N, C, P), x_nchw.dtype),
        grid_spec=pltpu.PrefetchScalarGridSpec(
            num_scalar_prefetch=0,
            grid=(N,),
            in_specs=[
                pl.BlockSpec((1, C, P), lambda n: (n, 0, 0)),
                pl.BlockSpec((Cout, 9 * Cin), lambda n: (0, 0)),
                pl.BlockSpec((Cout, 1), lambda n: (0, 0)),
            ],
            out_specs=pl.BlockSpec((1, C, P), lambda n: (n, 0, 0)),
            scratch_shapes=[
                pltpu.VMEM((C, P + 2 * (W + 1)), jnp.float32),   # padded image
                pltpu.VMEM((9 * C, P), jnp.float32),             # im2col
            ],
        ),
        compiler_params=pltpu.CompilerParams(
            dimension_semantics=("parallel",)),
    )(x_flat, w2d, b2d)

    return out_flat.reshape(N, C, H, W)


def _reference(x_nchw, w_hwio, b):
    """Pure-JAX reference: conv2d(3x3, pad=1) + bias + residual, NCHW."""
    y = jax.lax.conv_general_dilated(
        x_nchw, w_hwio, window_strides=(1, 1), padding="SAME",
        dimension_numbers=("NCHW", "HWIO", "NCHW"))
    y = y + b.reshape(1, -1, 1, 1)
    return x_nchw + y


if __name__ == "__main__":
    key = jax.random.PRNGKey(0)
    kx, kw, kb = jax.random.split(key, 3)

    N, C, H, W = 2, 4, 16, 16
    x = jax.random.normal(kx, (N, C, H, W), dtype=jnp.float32)
    # Deterministic synthetic parameters for Conv2d(C, C, 3, padding=1).
    w = jax.random.normal(kw, (3, 3, C, C), dtype=jnp.float32) * 0.1   # HWIO
    b = jax.random.normal(kb, (C,), dtype=jnp.float32) * 0.1

    out = jax.block_until_ready(bypass_forward(x, w, b))

    ref = _reference(x, w, b)
    assert out.shape == (N, C, H, W)
    assert jnp.allclose(out, ref, atol=1e-4, rtol=1e-4), \
        float(jnp.max(jnp.abs(out - ref)))

    print("KERNEL_OK")
</pallas_src>

<mosaic_0001>
module attributes {stable_mosaic.version = 11 : i64} {
  func.func @_bypass_conv_kernel(%arg0: i32, %arg1: memref<1x4x256xf32, #tpu.memory_space<vmem>>, %arg2: memref<4x36xf32, #tpu.memory_space<vmem>>, %arg3: memref<4x1xf32, #tpu.memory_space<vmem>>, %arg4: memref<1x4x256xf32, #tpu.memory_space<vmem>>, %arg5: memref<4x290xf32, #tpu.memory_space<vmem>>, %arg6: memref<36x256xf32, #tpu.memory_space<vmem>>) attributes {dimension_semantics = [#tpu.dimension_semantics<parallel>], iteration_bounds = array<i64: 2>, scalar_prefetch = 0 : i64, scratch_operands = 2 : i64, tpu.core_type = #tpu.core_type<tc>, window_params = [{transform_indices = @transform_0, window_bounds = array<i64: 1, 4, 256>}, {pipeline_mode = #tpu.pipeline_mode<synchronous>, transform_indices = @transform_1, window_bounds = array<i64: 4, 36>}, {pipeline_mode = #tpu.pipeline_mode<synchronous>, transform_indices = @transform_2, window_bounds = array<i64: 4, 1>}, {transform_indices = @transform_3, window_bounds = array<i64: 1, 4, 256>}]} {
    %c0 = arith.constant 0 : index
    %c0_0 = arith.constant 0 : index
    %c0_1 = arith.constant 0 : index
    %0 = vector.load %arg1[%c0, %c0_0, %c0_1] : memref<1x4x256xf32, #tpu.memory_space<vmem>>, vector<1x4x256xf32>
    %1 = vector.shape_cast %0 : vector<1x4x256xf32> to vector<4x256xf32>
    %cst = arith.constant 0.000000e+00 : f32
    %2 = vector.broadcast %cst : f32 to vector<4x17xf32>
    %c0_2 = arith.constant 0 : index
    %c0_3 = arith.constant 0 : index
    %3 = vector.load %arg5[%c0_2, %c0_3] : memref<4x290xf32, #tpu.memory_space<vmem>>, vector<4x17xf32>
    tpu.vector_store %arg5[%c0_2, %c0_3], %2 {strides = array<i32>} : memref<4x290xf32, #tpu.memory_space<vmem>>, vector<4x17xf32>,
    %cst_4 = arith.constant 0.000000e+00 : f32
    %4 = vector.broadcast %cst_4 : f32 to vector<4x17xf32>
    %c0_5 = arith.constant 0 : index
    %c273 = arith.constant 273 : index
    %5 = vector.load %arg5[%c0_5, %c273] : memref<4x290xf32, #tpu.memory_space<vmem>>, vector<4x17xf32>
    tpu.vector_store %arg5[%c0_5, %c273], %4 {strides = array<i32>} : memref<4x290xf32, #tpu.memory_space<vmem>>, vector<4x17xf32>,
    %c0_6 = arith.constant 0 : index
    %c17 = arith.constant 17 : index
    %6 = vector.load %arg5[%c0_6, %c17] : memref<4x290xf32, #tpu.memory_space<vmem>>, vector<4x256xf32>
    tpu.vector_store %arg5[%c0_6, %c17], %1 {strides = array<i32>} : memref<4x290xf32, #tpu.memory_space<vmem>>, vector<4x256xf32>,
    %7 = tpu.iota {dimensions = array<i32: 1>} : vector<4x256xi32>
    %c16_i32 = arith.constant 16 : i32
    %c0_i32 = arith.constant 0 : i32
    %8 = arith.cmpi eq, %c16_i32, %c0_i32 : i32
    %c1_i32 = arith.constant 1 : i32
    %9 = arith.select %8, %c1_i32, %c16_i32 : i32
    %10 = vector.broadcast %9 : i32 to vector<4x256xi32>
    %11 = arith.remsi %7, %10 : vector<4x256xi32>
    %c0_i32_7 = arith.constant 0 : i32
    %12 = vector.broadcast %c0_i32_7 : i32 to vector<4x256xi32>
    %13 = arith.cmpi ne, %11, %12 : vector<4x256xi32>
    %c0_i32_8 = arith.constant 0 : i32
    %14 = vector.broadcast %c0_i32_8 : i32 to vector<4x256xi32>
    %15 = arith.cmpi slt, %11, %14 : vector<4x256xi32>
    %c0_i32_9 = arith.constant 0 : i32
    %16 = arith.cmpi slt, %9, %c0_i32_9 : i32
    %17 = vector.broadcast %16 : i1 to vector<4x256xi1>
    %18 = vector.broadcast %17 : vector<4x256xi1> to vector<4x256xi1>
    %19 = arith.xori %15, %18 : vector<4x256xi1>
    %20 = arith.andi %19, %13 : vector<4x256xi1>
    %21 = vector.broadcast %9 : i32 to vector<4x256xi32>
    %22 = arith.addi %11, %21 : vector<4x256xi32>
    %23 = arith.select %20, %22, %11 : vector<4x256xi1>, vector<4x256xi32>
    %c1_i32_10 = arith.constant 1 : i32
    %24 = vector.broadcast %c1_i32_10 : i32 to vector<4x256xi32>
    %25 = arith.cmpi sge, %23, %24 : vector<4x256xi32>
    %c14_i32 = arith.constant 14 : i32
    %26 = vector.broadcast %c14_i32 : i32 to vector<4x256xi32>
    %27 = arith.cmpi sle, %23, %26 : vector<4x256xi32>
    %cst_11 = arith.constant 0.000000e+00 : f32
    %28 = vector.broadcast %cst_11 : f32 to vector<4x256xf32>
    %c0_12 = arith.constant 0 : index
    %c0_13 = arith.constant 0 : index
    %29 = vector.load %arg5[%c0_12, %c0_13] : memref<4x290xf32, #tpu.memory_space<vmem>>, vector<4x256xf32>
    %30 = arith.select %25, %29, %28 : vector<4x256xi1>, vector<4x256xf32>
    %c0_14 = arith.constant 0 : index
    %c0_15 = arith.constant 0 : index
    %31 = vector.load %arg6[%c0_14, %c0_15] : memref<36x256xf32, #tpu.memory_space<vmem>>, vector<4x256xf32>
    tpu.vector_store %arg6[%c0_14, %c0_15], %30 {strides = array<i32>} : memref<36x256xf32, #tpu.memory_space<vmem>>, vector<4x256xf32>,
    %c0_16 = arith.constant 0 : index
    %c1 = arith.constant 1 : index
    %32 = vector.load %arg5[%c0_16, %c1] : memref<4x290xf32, #tpu.memory_space<vmem>>, vector<4x256xf32>
    %c4 = arith.constant 4 : index
    %c0_17 = arith.constant 0 : index
    %33 = vector.load %arg6[%c4, %c0_17] : memref<36x256xf32, #tpu.memory_space<vmem>>, vector<4x256xf32>
    tpu.vector_store %arg6[%c4, %c0_17], %32 {strides = array<i32>} : memref<36x256xf32, #tpu.memory_space<vmem>>, vector<4x256xf32>,
    %c0_18 = arith.constant 0 : index
    %c2 = arith.constant 2 : index
    %34 = vector.load %arg5[%c0_18, %c2] : memref<4x290xf32, #tpu.memory_space<vmem>>, vector<4x256xf32>
    %35 = arith.select %27, %34, %28 : vector<4x256xi1>, vector<4x256xf32>
    %c8 = arith.constant 8 : index
    %c0_19 = arith.constant 0 : index
    %36 = vector.load %arg6[%c8, %c0_19] : memref<36x256xf32, #tpu.memory_space<vmem>>, vector<4x256xf32>
    tpu.vector_store %arg6[%c8, %c0_19], %35 {strides = array<i32>} : memref<36x256xf32, #tpu.memory_space<vmem>>, vector<4x256xf32>,
    %c0_20 = arith.constant 0 : index
    %c16 = arith.constant 16 : index
    %37 = vector.load %arg5[%c0_20, %c16] : memref<4x290xf32, #tpu.memory_space<vmem>>, vector<4x256xf32>
    %38 = arith.select %25, %37, %28 : vector<4x256xi1>, vector<4x256xf32>
    %c12 = arith.constant 12 : index
    %c0_21 = arith.constant 0 : index
    %39 = vector.load %arg6[%c12, %c0_21] : memref<36x256xf32, #tpu.memory_space<vmem>>, vector<4x256xf32>
    tpu.vector_store %arg6[%c12, %c0_21], %38 {strides = array<i32>} : memref<36x256xf32, #tpu.memory_space<vmem>>, vector<4x256xf32>,
    %c0_22 = arith.constant 0 : index
    %c17_23 = arith.constant 17 : index
    %40 = vector.load %arg5[%c0_22, %c17_23] : memref<4x290xf32, #tpu.memory_space<vmem>>, vector<4x256xf32>
    %c16_24 = arith.constant 16 : index
    %c0_25 = arith.constant 0 : index
    %41 = vector.load %arg6[%c16_24, %c0_25] : memref<36x256xf32, #tpu.memory_space<vmem>>, vector<4x256xf32>
    tpu.vector_store %arg6[%c16_24, %c0_25], %40 {strides = array<i32>} : memref<36x256xf32, #tpu.memory_space<vmem>>, vector<4x256xf32>,
    %c0_26 = arith.constant 0 : index
    %c18 = arith.constant 18 : index
    %42 = vector.load %arg5[%c0_26, %c18] : memref<4x290xf32, #tpu.memory_space<vmem>>, vector<4x256xf32>
    %43 = arith.select %27, %42, %28 : vector<4x256xi1>, vector<4x256xf32>
    %c20 = arith.constant 20 : index
    %c0_27 = arith.constant 0 : index
    %44 = vector.load %arg6[%c20, %c0_27] : memref<36x256xf32, #tpu.memory_space<vmem>>, vector<4x256xf32>
    tpu.vector_store %arg6[%c20, %c0_27], %43 {strides = array<i32>} : memref<36x256xf32, #tpu.memory_space<vmem>>, vector<4x256xf32>,
    %c0_28 = arith.constant 0 : index
    %c32 = arith.constant 32 : index
    %45 = vector.load %arg5[%c0_28, %c32] : memref<4x290xf32, #tpu.memory_space<vmem>>, vector<4x256xf32>
    %46 = arith.select %25, %45, %28 : vector<4x256xi1>, vector<4x256xf32>
    %c24 = arith.constant 24 : index
    %c0_29 = arith.constant 0 : index
    %47 = vector.load %arg6[%c24, %c0_29] : memref<36x256xf32, #tpu.memory_space<vmem>>, vector<4x256xf32>
    tpu.vector_store %arg6[%c24, %c0_29], %46 {strides = array<i32>} : memref<36x256xf32, #tpu.memory_space<vmem>>, vector<4x256xf32>,
    %c0_30 = arith.constant 0 : index
    %c33 = arith.constant 33 : index
    %48 = vector.load %arg5[%c0_30, %c33] : memref<4x290xf32, #tpu.memory_space<vmem>>, vector<4x256xf32>
    %c28 = arith.constant 28 : index
    %c0_31 = arith.constant 0 : index
    %49 = vector.load %arg6[%c28, %c0_31] : memref<36x256xf32, #tpu.memory_space<vmem>>, vector<4x256xf32>
    tpu.vector_store %arg6[%c28, %c0_31], %48 {strides = array<i32>} : memref<36x256xf32, #tpu.memory_space<vmem>>, vector<4x256xf32>,
    %c0_32 = arith.constant 0 : index
    %c34 = arith.constant 34 : index
    %50 = vector.load %arg5[%c0_32, %c34] : memref<4x290xf32, #tpu.memory_space<vmem>>, vector<4x256xf32>
    %51 = arith.select %27, %50, %28 : vector<4x256xi1>, vector<4x256xf32>
    %c32_33 = arith.constant 32 : index
    %c0_34 = arith.constant 0 : index
    %52 = vector.load %arg6[%c32_33, %c0_34] : memref<36x256xf32, #tpu.memory_space<vmem>>, vector<4x256xf32>
    tpu.vector_store %arg6[%c32_33, %c0_34], %51 {strides = array<i32>} : memref<36x256xf32, #tpu.memory_space<vmem>>, vector<4x256xf32>,
    %c0_35 = arith.constant 0 : index
    %c0_36 = arith.constant 0 : index
    %53 = vector.load %arg2[%c0_35, %c0_36] : memref<4x36xf32, #tpu.memory_space<vmem>>, vector<4x36xf32>
    %c0_37 = arith.constant 0 : index
    %c0_38 = arith.constant 0 : index
    %54 = vector.load %arg6[%c0_37, %c0_38] : memref<36x256xf32, #tpu.memory_space<vmem>>, vector<36x256xf32>
    %cst_39 = arith.constant dense<0.000000e+00> : vector<4x256xf32>
    %55 = tpu.matmul %53, %54, %cst_39 {dimension_numbers = #tpu.dot_dimension_numbers<[1], [0], [0], [1], [0, 0, 1, 1], [], []>} : vector<4x36xf32>, vector<36x256xf32>, vector<4x256xf32> -> vector<4x256xf32>
    %c0_40 = arith.constant 0 : index
    %c0_41 = arith.constant 0 : index
    %56 = vector.load %arg3[%c0_40, %c0_41] : memref<4x1xf32, #tpu.memory_space<vmem>>, vector<4x1xf32>
    %57 = vector.broadcast %56 : vector<4x1xf32> to vector<4x256xf32>
    %58 = arith.addf %55, %57 : vector<4x256xf32>
    %59 = arith.addf %58, %1 : vector<4x256xf32>
    %c0_42 = arith.constant 0 : index
    %c0_43 = arith.constant 0 : index
    %c0_44 = arith.constant 0 : index
    %60 = vector.load %arg4[%c0_42, %c0_43, %c0_44] : memref<1x4x256xf32, #tpu.memory_space<vmem>>, vector<1x4x256xf32>
    %61 = vector.shape_cast %60 : vector<1x4x256xf32> to vector<4x256xf32>
    %62 = vector.shape_cast %59 : vector<4x256xf32> to vector<1x4x256xf32>
    tpu.vector_store %arg4[%c0_42, %c0_43, %c0_44], %62 {strides = array<i32>} : memref<1x4x256xf32, #tpu.memory_space<vmem>>, vector<1x4x256xf32>,
    return
  }
  func.func @transform_0(%arg0: i32) -> (i32, i32, i32) {
    %c0_i32 = arith.constant 0 : i32
    %c0_i32_0 = arith.constant 0 : i32
    %c0_i32_1 = arith.constant 0 : i32
    return %arg0, %c0_i32, %c0_i32_0 : i32, i32, i32
  }
  func.func @transform_1(%arg0: i32) -> (i32, i32) {
    %c0_i32 = arith.constant 0 : i32
    %c0_i32_0 = arith.constant 0 : i32
    %c0_i32_1 = arith.constant 0 : i32
    return %c0_i32, %c0_i32_0 : i32, i32
  }
  func.func @transform_2(%arg0: i32) -> (i32, i32) {
    %c0_i32 = arith.constant 0 : i32
    %c0_i32_0 = arith.constant 0 : i32
    %c0_i32_1 = arith.constant 0 : i32
    return %c0_i32, %c0_i32_0 : i32, i32
  }
  func.func @transform_3(%arg0: i32) -> (i32, i32, i32) {
    %c0_i32 = arith.constant 0 : i32
    %c0_i32_0 = arith.constant 0 : i32
    %c0_i32_1 = arith.constant 0 : i32
    return %arg0, %c0_i32, %c0_i32_0 : i32, i32, i32
  }
}

</mosaic_0001>

<bundles_post_ra>
// kernel: tpu_custom_call.1
= control target key start
LH: loop header
LB: loop body
LE: loop exit
PB: predicated region body
PF: predicated region fallthrough
CT: control target
= control target key end

     0   :  { %8 = vsyncpa [#allocation5], 0  ;;  %s1042_s0 = inlined_call_operand.hbm [shape: f32[2,4,256], index: 0, kind: input, shape index: {}]   ;;  %s1043_s1 = inlined_call_operand.vmem [shape: f32[4,36], index: 1, kind: input, shape index: {}]   ;;  %s1044_s2 = inlined_call_operand.vmem [shape: f32[4,1], index: 2, kind: input, shape index: {}]   ;;  %s1045_s3 = inlined_call_operand.hbm [shape: f32[2,4,256], index: 3, kind: output, shape index: {}]  }
   0x1   :  { %10 = vsyncpa [#allocation5 + $0x1], 0 }
   0x2   :  { %11 = vsyncpa [#allocation6], 0 }
   0x3   :  { %13 = vsyncpa [#allocation6 + $0x1], 0  ;;  %s815_s12 = smov 0   ;;  %s817_s13 = smov 0  }
   0x4   :  { %s819_s14 = smov 0   ;;  %s821_s15 = smov 0  }
   0x5 LB: > { %s836_s16 = sadd.s32 4294967295, %s780_s15   ;;  %s605_s17 = sadd.s32 4294967294, %s780_s15   ;;  %s780_s15 = sphi %s821_s15, %s1070_s15   ;;  %s776_s14 = sphi %s819_s14, %s1069_s14   ;;  %s772_s13 = sphi %s817_s13, %s1068_s13   ;;  %s768_s12 = sphi %s815_s12, %s1067_s12  }
   0x6   : > { %s840_s18 = sadd.s32 1, %s780_s15   ;;  %s26_s19 = sadd.s32 1, %s776_s14 }
   0x7   : > { %s23_s20 = ssub.s32 %s780_s15, %s840_s18  ;;  %p33_p0 = scmp.ne.s32.totalorder %s776_s14, %s772_s13 }
   0x8   : > { %p24_p1 = scmp.eq.s32.totalorder %s23_s20, 0  ;;  %p34_p2 = scmp.eq.s32.totalorder %s780_s15, 0 }
   0x9   : > { %p39_p3 = scmp.ne.s32.totalorder %s772_s13, %s768_s12  ;;  %p40_p4 = scmp.eq.s32.totalorder %s836_s16, 0 }
   0xa   : > { %s852_s21 = scalar_select %p24_p1, %s776_s14, %s26_s19  }
   0xb   : > { %p854_p5 = por %p34_p2, %p33_p0  ;;  %p858_p6 = por %p40_p4, %p39_p3 }
   0xc   : > { %p105_p7 = scmp.eq.s32.totalorder %s836_s16, 1  ;;  %p111_p8 = scmp.eq.s32.totalorder %s605_s17, 1 }
   0xd   : > { %s1049_s23 = scalar_select %p858_p6, 1, 0 }
   0xe   : > { %p636_p10 = scmp.lt.s32.totalorder %s780_s15, 2  ;;  %p865_p11 = por %p105_p7, %p33_p0 }
   0xf   : > { %p869_p12 = por %p111_p8, %p39_p3  ;;  %s137_s26 = sand.u32 1, %s776_s14  }
  0x10   : > { %s1050_s24 = scalar_select %p865_p11, 1, 0 }
  0x11   : > { %s1051_s25 = scalar_select %p869_p12, 1, 0 }
  0x12   : > { %s622_s27 = sshll.u32 %s780_s15, 7  ;;  %s608_s28 = sshll.u32 %s137_s26, 3 }
  0x13   : > { %s878_s4 = scalar_lea.hbm %s1042_s0, %s622_s27  ;;  %s141_s5 = scalar_lea.vmem [#allocation4], %s608_s28 }
  0x14   : > { %s149_s6 = sshll.u32 %s141_s5, 4  ;;  %p882_p13 = pnand %p636_p10, %p854_p5  ;;  %s886_s6 = int_to_ptr.vmem [resolvable:$true] %s149_s6 }
  0x15   : > { %s138_s8 = scalar_lea.sflag [#allocation5], %s137_s26  ;;  %s688_s9 = scalar_lea.hbm %s878_s4, 128 }
  0x16   : > { %p689_p2 = scmp.ne.s32.totalorder %s878_s4, %s688_s9  ;;  %p690_p3 = pneg %p882_p13 }
  0x17   : > { %s693_s17 = scalar_lea.hbm %s1042_s0, 256  ;;  %p694_p5 = scmp.lt.s32.totalorder %s878_s4, %s1042_s0 }
  0x18   : > { %p691_p4 = pnand %p690_p3, %p689_p2  ;;  %p695_p8 = scmp.lt.s32.totalorder %s693_s17, %s688_s9 }
  0x1a   : > { %p692_p7 = pneg %p691_p4  ;;  %p696_p10 = por %p695_p8, %p694_p5 }
  0x1c   : > { %p697_p9 = pnand %p696_p10, %p692_p7 }
  0x1e   : > { %700 = shalt.err (!%p697_p9)
}
  0x1f   : > { %s701_s22 = scalar_lea.vmem %s886_s6, 128  ;;  %s782_s26 = smov [#allocation4]  }
  0x20   : > { %p702_p0 = scmp.ne.s32.totalorder %s886_s6, %s701_s22  ;;  %s706_s27 = sshll.u32 %s782_s26, 4  ;;  %s707_s27 = int_to_ptr.vmem [resolvable:$false] %s706_s27 }
  0x21   : > { %s708_s28 = scalar_lea.vmem %s707_s27, 256  ;;  %p709_p4 = scmp.lt.s32.totalorder %s886_s6, %s707_s27 }
  0x22   : > { %p704_p1 = pnand %p702_p0, %p690_p3  ;;  %p710_p12 = scmp.lt.s32.totalorder %s708_s28, %s701_s22 }
  0x24   : > { %p705_p2 = pneg %p704_p1  ;;  %p711_p11 = por %p710_p12, %p709_p4 }
  0x26   : > { %p712_p6 = pnand %p711_p11, %p705_p2 }
  0x28   : > { %715 = shalt.err (!%p712_p6)
}
  0x29   : > { %631 = dma.hbm_to_vmem [thread:$0]  (!%p882_p13), %s878_s4, 128, %s886_s6, %s138_s8  }
  0x2a   : > { %p1053_p9 = scmp.lt.s32.totalorder %s780_s15, 3  ;;  %p1054_p7 = scmp.ge.s32.totalorder %s780_s15, 1 }
  0x2c   : > { %p155_p0 = pnand %p1054_p7, %p1053_p9 }
  0x2d   : > { %s913_s29 = sand.u32 (!%p155_p0), 1, %s772_s13   ;;  %p1055_p6 = scmp.ne.s32.totalorder (!%p155_p0), %s1049_s23, 0 }
  0x2e   : > { %158 = sbr.rel (%p155_p0) target bundleno = 562 (0x232), region = 32  ;;  %s612_s30 = sshll.u32 (!%p155_p0), %s913_s29, 3 }
  0x2f   : > { %s161_s5 = scalar_lea.sflag (!%p155_p0), [#allocation5], %s913_s29  ;;  %s164_s7 = scalar_lea.vmem (!%p155_p0), [#allocation4], %s612_s30 }
  0x33   : > { %759 = dma.done.wait (%p1055_p6), %s161_s5, 128  }
  0x34   : > { %761 = vsyncadd (%p1055_p6), %s161_s5, 4294967168  ;;  %vm188_vm0 = vcmask 134144   ;;  %vm190_vm1 = vcmask 273544   ;;  %v783_v0 = vmov 0.0   ;;  %v924_v1 = vld [vmem:[%s164_s7] sm:$0xff]  ;;  %s784_s4 = smov 17   ;;  %v205_v2 = vlaneseq }
  0x35   : > { %189 = vst.msk [vmem:[#allocation2] sm:$0xf] %vm188_vm0, %v783_v0  ;;  %504 = vmatprep.mubr.f32.mxu0 %v783_v0  ;;  %193 = vrot.lane.b32.xlu0 %v924_v1, %s784_s4  ;;  %vm200_vm2 = vcmask 1043592   ;;  %vm201_vm3 = vcmask 1047556   ;;  %vm196_vm4 = vcmask 138240   ;;  %s785_s23 = smov 94  }
  0x36   : > { %191 = vst.msk [vmem:[#allocation2 + $0x8] sm:$0xf] %vm190_vm1, %v783_v0  ;;  %v927_v3 = vand.u32 127, %v205_v2  ;;  %vm202_vm5 = vmor %vm201_vm3, %vm200_vm2  ;;  %s786_s6 = smov 110   ;;  %s787_s8 = smov 95   ;;  %v793_v25 = vmov 0  }
  0x37   : > { %s788_s9 = smov 96   ;;  %s789_s10 = smov 111   ;;  %681 = vset.pattern.permute.xlu1 %v793_v25  ;;  %682 = vset.pattern.permute.xlu0 %v793_v25  ;;  %v423_v26 = vld [vmem:[%s1044_s2] sm:$0xf]  ;;  %vm403_vm8 = vcmask 769024   ;;  %vm338_vm10 = vcmask 900096  }
  0x38   : > { %v931_v7 = vadd.s32 128, %v927_v3  ;;  %v212_v9 = vand.u32 15, %v927_v3  ;;  %s790_s11 = smov 112   ;;  %s791_s17 = smov 127   ;;  %vm364_vm12 = vcmask 785408   ;;  %vm433_vm13 = vcmask 1043456  }
  0x39   : > { %s792_s19 = smov 126   ;;  %vm294_vm14 = vcmask 916480   ;;  %vm385_vm15 = vcmask 777216   ;;  %vm274_vm1 = vcmask 1031168   ;;  %vm256_vm2 = vcmask 1039360   ;;  %s623_s28 = sshll.u32 %s836_s16, 7 }
  0x3a   : > { %v219_v8 = vand.u32 15, %v931_v7  ;;  %vm944_vm7 = vcmp.ge.s32.totalorder %v212_v9, 1  ;;  %vm970_vm11 = vcmp.le.s32.totalorder %v212_v9, 14  ;;  %vm429_vm3 = vcmask 293888   ;;  %s186_s5 = scalar_lea.vmem [#allocation7], %s612_s30  ;;  %p1064_p12 = scmp.ne.s32.totalorder %s1050_s24, 0 }
  0x3b   : > { %s535_s7 = sshll.u32 %s186_s5, 4  ;;  %s794_s16 = smov [#allocation7]   ;;  %s536_s7 = int_to_ptr.vmem [resolvable:$true] %s535_s7 }
  0x3c   : > { %vm938_vm6 = vcmp.ge.s32.totalorder %v219_v8, 1  ;;  %vm961_vm9 = vcmp.le.s32.totalorder %v219_v8, 14 }
  0xa7   : > { %v194_v4 = vpop.permute.xlu0 %193 }
  0xa8   : > { %v195_v5 = vrot.slane %v194_v4, 4 }
  0xaa   : > { %v197_v6 = vsel %vm196_vm4, %v195_v5, %v194_v4  ;;  %204 = vst.msk [vmem:[#allocation2 + $0x8] sm:$0xf] %vm188_vm0, %v195_v5  ;;  %vm320_vm0 = vcmask 908288  }
  0xab   : > { %203 = vst.msk [vmem:[#allocation2] sm:$0xff] %vm202_vm5, %v197_v6 }
  0xb1   : > { %v393_v10 = vld [vmem:[#allocation2 + $0x8] sm:$0xf] }
  0xb2   : > { %401 = vrot.lane.b32.xlu1 %v393_v10, %s785_s23  ;;  %v327_v11 = vld [vmem:[#allocation2] sm:$0xff]  ;;  %v328_v15 = vld [vmem:[#allocation2 + $0x8] sm:$0xf] }
  0xb3   : > { %332 = vrot.lane.b32.xlu0 %v327_v11, %s786_s6  ;;  %v331_v14 = vcombine.high %v327_v11, %v327_v11  ;;  %v240_v17 = vsel %vm944_vm7, %v327_v11, 0.0  ;;  %v354_v18 = vld [vmem:[#allocation2 + $0x8] sm:$0xf]  ;;  %v377_v22 = vcombine.low %v327_v11, %v327_v11 }
  0xb4   : > { %242 = vst [vmem:[#allocation3 + $0x30] sm:$0xf] %v240_v17  ;;  %v284_v19 = vld [vmem:[#allocation2 + $0x8] sm:$0xf] }
  0xb5   : > { %v241_v16 = vsel %vm938_vm6, %v331_v14, 0.0  ;;  %v310_v20 = vld [vmem:[#allocation2 + $0x8] sm:$0xf] }
  0xb6   : > { %336 = vrot.lane.b32.xlu1 %v328_v15, %s786_s6  ;;  %243 = vst [vmem:[#allocation3] sm:$0xf] %v241_v16  ;;  %v264_v21 = vld [vmem:[#allocation2 + $0x8] sm:$0xf] }
  0xb7   : > { %381 = vrot.lane.b32.xlu0 %v327_v11, %s787_s8  ;;  %v686_v23 = vld [vmem:[#allocation2 + $0x8] ss:$0 sps:$4 sm:$0xff]  }
  0xb8   : > { %v687_v24 = vld [vmem:[#allocation2 + $0x8] ss:$0 sps:$4 sm:$0xff]  }
  0xba   : > { %362 = vrot.lane.b32.xlu1 %v354_v18, %s788_s9 }
  0xbb   : > { %314 = vrot.lane.b32.xlu0 %v327_v11, %s789_s10 }
  0xbe   : > { %292 = vrot.lane.b32.xlu1 %v284_v19, %s790_s11 }
  0xbf   : > { %252 = vrot.lane.b32.xlu0 %v327_v11, %s791_s17 }
  0xc2   : > { %318 = vrot.lane.b32.xlu1 %v310_v20, %s789_s10 }
  0xc3   : > { %399 = vrot.lane.b32.xlu0 %v331_v14, %s785_s23 }
  0xc6   : > { %272 = vrot.lane.b32.xlu1 %v264_v21, %s792_s19 }
  0xc7   : > { %334 = vrot.lane.b32.xlu0 %v331_v14, %s786_s6  ;;  %s533_s6 = scalar_lea.hbm %s1045_s3, %s623_s28 }
  0xca   : > { %397 = vrot.lane.b32.xlu1 %v327_v11, %s785_s23 }
  0xcb   : > { %360 = vrot.lane.b32.xlu0 %v331_v14, %s788_s9 }
  0xce   : > { %358 = vrot.lane.b32.xlu1 %v327_v11, %s788_s9  ;;  %s716_s9 = scalar_lea.vmem %s536_s7, 128 }
  0xcf   : > { %290 = vrot.lane.b32.xlu0 %v331_v14, %s790_s11  ;;  %p717_p11 = scmp.ne.s32.totalorder %s536_s7, %s716_s9 }
  0xd1   : > { %p718_p13 = pnand %p717_p11, %p1064_p12 }
  0xd2   : > { %288 = vrot.lane.b32.xlu1 %v327_v11, %s790_s11 }
  0xd3   : > { %379 = vrot.lane.b32.xlu0 %v377_v22, %s787_s8  ;;  %p719_p1 = pneg %p718_p13 }
  0xd6   : > { %383 = vrot.lane.b32.xlu1 %v686_v23, %s787_s8  ;;  %s521_s8 = scalar_lea.sflag [#allocation6], %s913_s29 }
  0xd7   : > { %316 = vrot.lane.b32.xlu0 %v331_v14, %s789_s10  ;;  %s720_s10 = sshll.u32 %s794_s16, 4  ;;  %s721_s10 = int_to_ptr.vmem [resolvable:$false] %s720_s10 }
  0xd8   : > { %s722_s30 = scalar_lea.vmem %s721_s10, 256  ;;  %p723_p3 = scmp.lt.s32.totalorder %s536_s7, %s721_s10 }
  0xd9   : > { %p724_p5 = scmp.lt.s32.totalorder %s722_s30, %s716_s9 }
  0xda   : > { %268 = vrot.lane.b32.xlu1 %v327_v11, %s792_s19 }
  0xdb   : > { %270 = vrot.lane.b32.xlu0 %v331_v14, %s792_s19  ;;  %p725_p8 = por %p724_p5, %p723_p3 }
  0xdd   : > { %p726_p10 = pnand %p725_p8, %p719_p1 }
  0xde   : > { %254 = vrot.lane.b32.xlu1 %v687_v24, %s791_s17 }
  0xdf   : > { %250 = vrot.lane.b32.xlu0 %v377_v22, %s791_s17 }
  0xe2   : > { %426 = vperm.xlu1 %681, %v423_v26  }
 0x124   : > { %v402_v27 = vpop.permute.xlu1 %401 }
 0x125   : > { %v333_v28 = vpop.permute.xlu0 %332 }
 0x128   : > { %v337_v29 = vpop.permute.xlu1 %336 }
 0x129   : > { %v382_v30 = vpop.permute.xlu0 %381 }
 0x12c   : > { %v363_v31 = vpop.permute.xlu1 %362 }
 0x12d   : > { %v315_v32 = vpop.permute.xlu0 %314 }
 0x130   : > { %v293_v33 = vpop.permute.xlu1 %292 }
 0x131   : > { %v957_v34 = vpop.permute.xlu0 %252 }
 0x134   : > { %v319_v35 = vpop.permute.xlu1 %318 }
 0x135   : > { %v400_v37 = vpop.permute.xlu0 %399 }
 0x136   : > { %v405_v38 = vsel %vm403_vm8, %v400_v37, %v402_v27 }
 0x137   : > { %v409_v39 = vsel %vm961_vm9, %v405_v38, 0.0 }
 0x138   : > { %411 = vst [vmem:[#allocation3 + $0x38] sm:$0xf] %v409_v39  ;;  %v273_v40 = vpop.permute.xlu1 %272 }
 0x139   : > { %v335_v42 = vpop.permute.xlu0 %334 }
 0x13a   : > { %v339_v43 = vsel %vm338_vm10, %v333_v28, %v335_v42  ;;  %v340_v44 = vsel %vm338_vm10, %v335_v42, %v337_v29  ;;  %v412_v29 = vld [vmem:[%s1043_s1] sm:$0xf] }
 0x13b   : > { %v343_v45 = vsel %vm970_vm11, %v339_v43, 0.0  ;;  %v344_v46 = vsel %vm961_vm9, %v340_v44, 0.0 }
 0x13c   : > { %v347_v47 = vrot.slane %v343_v45, 4  ;;  %v348_v48 = vrot.slane %v344_v46, 4  ;;  %v398_v49 = vpop.permute.xlu1 %397 }
 0x13d   : > { %v404_v50 = vsel %vm403_vm8, %v398_v49, %v400_v37  ;;  %v361_v51 = vpop.permute.xlu0 %360 }
 0x13e   : > { %351 = vst [vmem:[#allocation3 + $0x48] sm:$0xf0] %v347_v47  ;;  %352 = vst [vmem:[#allocation3 + $0x28] sm:$0xf0] %v348_v48  ;;  %v408_v52 = vsel %vm970_vm11, %v404_v50, 0.0  ;;  %v366_v53 = vsel %vm364_vm12, %v361_v51, %v363_v31 }
 0x13f   : > { %410 = vst [vmem:[#allocation3 + $0x40] sm:$0xf] %v408_v52  ;;  %v370_v54 = vsel %vm938_vm6, %v366_v53, 0.0  ;;  %v422_v55 = vld [vmem:[#allocation3 + $0x38] sm:$0xf] }
 0x140   : > { %372 = vst [vmem:[#allocation3 + $0x20] sm:$0xf] %v370_v54  ;;  %v359_v56 = vpop.permute.xlu1 %358  ;;  %614 = vmatprep.subr.msk.mxu0 %vm433_vm13, %v422_v55 }
 0x141   : > { %v365_v57 = vsel %vm364_vm12, %v359_v56, %v361_v51  ;;  %v291_v58 = vpop.permute.xlu0 %290 }
 0x142   : > { %v369_v59 = vsel %vm944_vm7, %v365_v57, 0.0  ;;  %v296_v60 = vsel %vm294_vm14, %v291_v58, %v293_v33  ;;  %v511_v33 = vcombine.high %v924_v1, %v924_v1 }
 0x143   : > { %371 = vst [vmem:[#allocation3 + $0x8] sm:$0xf] %v369_v59  ;;  %v300_v61 = vsel %vm938_vm6, %v296_v60, 0.0 }
 0x144   : > { %v304_v62 = vrot.slane %v300_v61, 4  ;;  %v289_v63 = vpop.permute.xlu1 %288 }
 0x145   : > { %v295_v0 = vsel %vm294_vm14, %v289_v63, %v291_v58  ;;  %v380_v2 = vpop.permute.xlu0 %379 }
 0x146   : > { %308 = vst [vmem:[#allocation3 + $0x10] sm:$0xf0] %v304_v62  ;;  %v299_v3 = vsel %vm944_vm7, %v295_v0, 0.0  ;;  %v386_v4 = vsel %vm385_vm15, %v380_v2, %v382_v30  ;;  %v421_v5 = vld [vmem:[#allocation3 + $0x40] sm:$0xf] }
 0x147   : > { %v303_v6 = vrot.slane %v299_v3, 4  ;;  %390 = vst [vmem:[#allocation3 + $0x8] sm:$0xf0] %v386_v4  ;;  %615 = vmatpush1.msk.msra.mxu0 %vm433_vm13, %v421_v5 }
 0x148   : > { %v384_v7 = vpop.permute.xlu1 %383 }
 0x149   : > { %307 = vst [vmem:[#allocation3 + $0x18] sm:$0xf0] %v303_v6  ;;  %v387_v8 = vsel %vm385_vm15, %v382_v30, %v384_v7  ;;  %v317_v9 = vpop.permute.xlu0 %316 }
 0x14a   : > { %391 = vst [vmem:[#allocation3 + $0x20] sm:$0xf0] %v387_v8  ;;  %v321_v10 = vsel %vm320_vm0, %v315_v32, %v317_v9  ;;  %v322_v11 = vsel %vm320_vm0, %v317_v9, %v319_v35 }
 0x14b   : > { %325 = vst [vmem:[#allocation3 + $0x48] sm:$0xf] %v321_v10  ;;  %326 = vst [vmem:[#allocation3 + $0x28] sm:$0xf] %v322_v11 }
 0x14c   : > { %v269_v12 = vpop.permute.xlu1 %268 }
 0x14d   : > { %v271_v13 = vpop.permute.xlu0 %270 }
 0x14e   : > { %v275_v14 = vsel %vm274_vm1, %v269_v12, %v271_v13  ;;  %v276_v15 = vsel %vm274_vm1, %v271_v13, %v273_v40  ;;  %v419_v23 = vld [vmem:[#allocation3 + $0x8] sm:$0xff] }
 0x14f   : > { %v279_v16 = vsel %vm970_vm11, %v275_v14, 0.0  ;;  %v280_v17 = vsel %vm961_vm9, %v276_v15, 0.0 }
 0x150   : > { %281 = vst [vmem:[#allocation3 + $0x18] sm:$0xf] %v279_v16  ;;  %282 = vst [vmem:[#allocation3 + $0x10] sm:$0xf] %v280_v17  ;;  %v255_v18 = vpop.permute.xlu1 %254 }
 0x151   : > { %v258_v19 = vsel %vm256_vm2, %v957_v34, %v255_v18  ;;  %v251_v20 = vpop.permute.xlu0 %250  ;;  %v420_v21 = vld [vmem:[#allocation3 + $0x20] sm:$0xff] }
 0x152   : > { %262 = vst [vmem:[#allocation3] sm:$0xf0] %v258_v19  ;;  %v257_v22 = vsel %vm256_vm2, %v251_v20, %v957_v34  ;;  %464 = vmatprep.subr.mxu0 %v420_v21  ;;  %v418_v24 = vld [vmem:[#allocation3 + $0x28] sm:$0xff] }
 0x153   : > { %261 = vst [vmem:[#allocation3 + $0x30] sm:$0xf0] %v257_v22  ;;  %465 = vmatpush1.msra.mxu0 %v419_v23  ;;  %v417_v25 = vld [vmem:[#allocation3 + $0x48] sm:$0xff] }
 0x154   : > { %466 = vmatprep.subr.mxu0 %v418_v24 }
 0x155   : > { %467 = vmatpush1.msra.mxu0 %v417_v25 }
 0x157   : > { %v416_v26 = vld [vmem:[#allocation3 + $0x10] sm:$0xff]  ;;  %v415_v27 = vld [vmem:[#allocation3 + $0x18] sm:$0xff] }
 0x158   : > { %468 = vmatprep.subr.mxu0 %v416_v26 }
 0x159   : > { %469 = vmatpush1.msra.mxu0 %v415_v27  ;;  %v414_v28 = vld [vmem:[#allocation3] sm:$0xff] }
 0x15a   : > { %470 = vmatprep.subr.mxu0 %v414_v28  ;;  %v413_v30 = vld [vmem:[#allocation3 + $0x30] sm:$0xff] }
 0x15b   : > { %471 = vmatpush1.msra.mxu0 %v413_v30 }
 0x15c   : > { %616 = vmatmul.mubr.msk.f32.vlgmr.msra.gmra.mxu0 %vm429_vm3, %v412_v29 }
 0x15d   : > { %v427_v31 = vpop.permute.xlu1 %426 }
 0x21c   : > { %v506_v32 = vpop.f32.mrf.mxu0 }
 0x21d   : > { %v507_v34 = vadd.f32 %v506_v32, %v427_v31 }
 0x21e   : > { %v508_v35 = vpop.f32.mrf.mxu0 }
 0x21f   : > { %v509_v36 = vadd.f32 %v508_v35, %v427_v31  ;;  %v513_v37 = vadd.f32 %v507_v34, %v924_v1 }
 0x221   : > { %v514_v38 = vadd.f32 %v511_v33, %v509_v36 }
 0x223   : > { %v517_v39 = vcombine.low %v513_v37, %v514_v38 }
 0x225   : > { %519 = vst [vmem:[%s186_s5] sm:$0xff] %v517_v39 }
 0x226   : > { %729 = shalt.err (!%p726_p10)
}
 0x227   : > { %s730_s11 = scalar_lea.hbm %s533_s6, 128  ;;  %s734_s19 = scalar_lea.hbm %s1045_s3, 256 }
 0x228   : > { %p731_p2 = scmp.ne.s32.totalorder %s533_s6, %s730_s11  ;;  %p735_p7 = scmp.lt.s32.totalorder %s533_s6, %s1045_s3 }
 0x229   : > { %p736_p0 = scmp.lt.s32.totalorder %s734_s19, %s730_s11 }
 0x22a   : > { %p732_p4 = pnand %p731_p2, %p1064_p12 }
 0x22b   : > { %p737_p6 = por %p736_p0, %p735_p7 }
 0x22c   : > { %p733_p9 = pneg %p732_p4 }
 0x22e   : > { %p738_p11 = pnand %p737_p6, %p733_p9 }
 0x230   : > { %741 = shalt.err (!%p738_p11)
}
 0x231   : > { %626 = dma.vmem_to_hbm [thread:$0]  (%p1064_p12), %s536_s7, 128, %s533_s6, %s521_s8  }
 0x232 PF: > { %s547_s26 = sand.u32 1, %s768_s12   ;;  %p1065_p13 = scmp.ne.s32.totalorder %s1051_s25, 0 }
 0x233   : > { %p1066_p1 = scmp.ge.s32.totalorder %s780_s15, 2  ;;  %s548_s27 = scalar_lea.sflag [#allocation6], %s547_s26 }
 0x235   : > { %p633_p3 = pnand %p1066_p1, %p1065_p13 }
 0x237   : > { %p634_p5 = pneg %p633_p3 }
 0x239   : > { %763 = dma.done.wait (%p634_p5), %s548_s27, 128  }
 0x23a   : > { %765 = vsyncadd (%p634_p5), %s548_s27, 4294967168  ;;  %p16_p8 = scmp.ge.s32.totalorder %s840_s18, 4   ;;  %s1067_s12 = smov %s772_s13 }
 0x23b   : > { %s1068_s13 = smov %s776_s14  ;;  %s1069_s14 = smov %s852_s21 }
 0x23c   : > { %s1070_s15 = smov %s840_s18  ;;  %18 = sbr.rel (!%p16_p8) target bundleno = 5 (0x5), region = 77 }
 0x241   :  { %553 = vsyncpa [#allocation5], 1 }
 0x242   :  { %555 = vsyncpa [#allocation5 + $0x1], 1 }
 0x243   :  { %556 = vsyncpa [#allocation6], 1 }
 0x244   :  { %558 = vsyncpa [#allocation6 + $0x1], 1 }

</bundles_post_ra>
